<compile_context>
chip_gen: v5e
topology: v5e:2x2
jax: 0.10.0
libtpu: 0.0.40
codegen_flags: <defaults>
</compile_context>

<pallas_src>
import functools

import jax
import jax.numpy as jnp
from jax.experimental import pallas as pl
from jax.experimental.pallas import tpu as pltpu


# ----------------------------- Pallas kernels ------------------------------ #

def _cascade1_kernel(xT_ref, p_ref, s_ref, o_ref):
    """layers == 1:  out = Lout(cat([x, relu(L1(x))]))   (feature-major).

    xT_ref: (2, BN)   batch on the 128-lane axis
    p_ref : (H, 4)    f32 resident params: [b1 | woh | W1 (2 cols)]
    s_ref : (3,)      f32 SMEM scalars: [wox0, wox1, bo]
    o_ref : (1, BN)   lane-dense output tile
    """
    x = xT_ref[...].astype(jnp.float32)
    x0, x1 = x[0:1, :], x[1:2, :]
    p = p_ref[...]
    b1, woh = p[:, 0:1], p[:, 1:2]
    w1 = p[:, 2:4]
    wox0, wox1, bo = s_ref[0], s_ref[1], s_ref[2]

    # K=2 contraction as VPU broadcast-FMAs (a 2-deep MXU matmul would be >99% idle).
    h = jnp.maximum(w1[:, 0:1] * x0 + w1[:, 1:2] * x1 + b1, 0.0)       # (H, BN)
    out = (wox0 * x0 + wox1 * x1
           + jnp.sum(woh * h, axis=0, keepdims=True)                   # sublane reduce (XLU)
           + bo)
    o_ref[...] = out.astype(o_ref.dtype)


def _cascade2_kernel(xT_ref, w2h_ref, p_ref, s_ref, o_ref):
    """layers == 2 cascade (feature-major).

    xT_ref : (2, BN)     streamed input, batch on lanes
    w2h_ref: (H, H)      resident MXU LHS (bf16 on the bf16 path -> single pass)
    p_ref  : (H, 8)      f32 resident params:
                         [b1 | b2 | woh1 | woh2 | W1 (2) | W2x (2)]
    s_ref  : (3,)        f32 SMEM scalars: [wox0, wox1, bo]
    o_ref  : (1, BN)
    """
    x = xT_ref[...].astype(jnp.float32)
    x0, x1 = x[0:1, :], x[1:2, :]
    p = p_ref[...]
    b1, b2 = p[:, 0:1], p[:, 1:2]
    woh1, woh2 = p[:, 2:3], p[:, 3:4]
    w1, w2x = p[:, 4:6], p[:, 6:8]
    wox0, wox1, bo = s_ref[0], s_ref[1], s_ref[2]

    # h1 = relu(W1 @ xT + b1): K=2 -> VPU broadcast-FMAs, f32 accumulation.
    h1 = jnp.maximum(w1[:, 0:1] * x0 + w1[:, 1:2] * x1 + b1, 0.0)      # (H, BN)
    # h2 = relu(W2x @ xT + W2h @ h1 + b2): only the H x H part uses the MXU.
    # On the bf16 path both operands are bf16 (single MXU pass, f32 accum).
    h1_mm = h1.astype(w2h_ref.dtype)
    h2 = jnp.maximum(
        w2x[:, 0:1] * x0 + w2x[:, 1:2] * x1
        + jnp.dot(w2h_ref[...], h1_mm, preferred_element_type=jnp.float32)
        + b2, 0.0)                                                     # (H, BN)
    # out = Wo @ cat([x, h1, h2]) + bo: VPU FMAs + sublane reductions (XLU).
    out = (wox0 * x0 + wox1 * x1
           + jnp.sum(woh1 * h1, axis=0, keepdims=True)
           + jnp.sum(woh2 * h2, axis=0, keepdims=True)
           + bo)
    o_ref[...] = out.astype(o_ref.dtype)


# ------------------------- parameter packing -------------------------------- #

def _pack_params_1(params):
    """layers==1: (H,4) f32 block [b1 | woh | W1] + (3,) f32 scalars."""
    wo = params["Wo"].astype(jnp.float32)                  # (1, H + 2)
    packed = jnp.concatenate(
        [params["b1"].astype(jnp.float32)[:, None],        # col 0: b1
         wo[0, 2:][:, None],                               # col 1: woh
         params["W1"].astype(jnp.float32)],                # cols 2:4  W1
        axis=1)
    scal = jnp.stack([wo[0, 0], wo[0, 1],
                      params["bo"].astype(jnp.float32)[0]])
    return packed, scal


def _pack_params_2(params):
    """layers==2: (H,H) W2h + (H,8) f32 block + (3,) f32 scalars."""
    H = params["W1"].shape[0]
    w2 = params["W2"].astype(jnp.float32)                  # (H, H + 2)
    wo = params["Wo"].astype(jnp.float32)                  # (1, 2H + 2)
    w2h = w2[:, 2:]                                        # (H, H) MXU LHS
    packed = jnp.concatenate(
        [params["b1"].astype(jnp.float32)[:, None],        # col 0: b1
         params["b2"].astype(jnp.float32)[:, None],        # col 1: b2
         wo[0, 2:2 + H][:, None],                          # col 2: woh1
         wo[0, 2 + H:][:, None],                           # col 3: woh2
         params["W1"].astype(jnp.float32),                 # cols 4:6  W1
         w2[:, :2]],                                       # cols 6:8  W2x
        axis=1)
    scal = jnp.stack([wo[0, 0], wo[0, 1],
                      params["bo"].astype(jnp.float32)[0]])
    return w2h, packed, scal


# ------------------------- adaptive batch tile ------------------------------ #

def _auto_block_batch(n, hidden):
    """Batch-tile width: multiple of 1024, VMEM-budgeted, even grid if multi-tile."""
    # ~4 live (hidden, BN) f32 temporaries dominate per-step VMEM; keep them
    # under ~24 MiB so the same tile fits v7x's 64 MiB core as well.
    budget = 24 << 20
    cap = (budget // (16 * max(hidden, 1)) // 1024) * 1024
    cap = max(1024, min(32768, cap))
    n_up = 1024 * ((n + 1023) // 1024)
    if n_up <= cap:
        return n_up                          # single tile, minimal padding waste
    # Multi-tile: even number of steps so v7x's two TensorCores both get work.
    steps = -(-n_up // cap)
    if steps % 2:
        steps += 1
    per = -(-n_up // steps)
    return min(cap, 1024 * (-(-per // 1024)))


# ------------------------------ wrapper ------------------------------------ #

@functools.partial(jax.jit, static_argnames=("layers", "block_batch", "compute_dtype"))
def cascade_net_forward(x, params, layers=2, block_batch=None, compute_dtype=None):
    """Fused CascadeNet forward.

    x:      (N, 2) float array (rows = samples); any N is supported.
    params: PyTorch nn.Linear convention: W (out_features, in_features), b (out_features,).
    compute_dtype: optional streaming dtype for x / the MXU operands (e.g.
        jnp.bfloat16 halves the dominant HBM stream); biases, output weights and
        all accumulation stay f32.
    """
    n, f = x.shape
    assert f == 2
    hidden = params["W1"].shape[0]
    dt = x.dtype if compute_dtype is None else jnp.dtype(compute_dtype)

    if block_batch is None:
        block_batch = _auto_block_batch(n, hidden)
    n_pad = block_batch * (-(-n // block_batch))

    # Cast to the streaming dtype BEFORE the HBM-bound pad+transpose so that
    # layout pass moves half the bytes on the bf16 path.
    # TODO(synk): folding the transpose into the kernel would need a last-dim-2
    # VMEM tile (64x lane padding), so it stays a wrapper-side XLA op.
    xT = jnp.pad(x.astype(dt), ((0, n_pad - n), (0, 0))).T            # (2, n_pad)

    if layers == 1:
        packed, scal = _pack_params_1(params)
        operands = (xT, packed, scal)
        in_specs = [
            pl.BlockSpec((2, block_batch), lambda i: (0, i)),         # streamed x tile
            pl.BlockSpec(packed.shape, lambda i: (0, 0)),             # resident params
            pl.BlockSpec(memory_space=pltpu.MemorySpace.SMEM),        # 3 scalars
        ]
        kernel = _cascade1_kernel
        flops = (8 * hidden + 8) * n_pad
    else:
        w2h, packed, scal = _pack_params_2(params)
        w2h = w2h.astype(dt)              # bf16 MXU operand on the bf16 path
        operands = (xT, w2h, packed, scal)
        in_specs = [
            pl.BlockSpec((2, block_batch), lambda i: (0, i)),         # streamed x tile
            pl.BlockSpec(w2h.shape, lambda i: (0, 0)),                # resident MXU LHS
            pl.BlockSpec(packed.shape, lambda i: (0, 0)),             # resident params
            pl.BlockSpec(memory_space=pltpu.MemorySpace.SMEM),        # 3 scalars
        ]
        kernel = _cascade2_kernel
        flops = (2 * hidden * hidden + 14 * hidden + 8) * n_pad

    bytes_accessed = n_pad * (2 * jnp.dtype(dt).itemsize + jnp.dtype(x.dtype).itemsize)

    out = pl.pallas_call(
        kernel,
        out_shape=jax.ShapeDtypeStruct((1, n_pad), x.dtype),
        grid=(n_pad // block_batch,),
        in_specs=in_specs,
        out_specs=pl.BlockSpec((1, block_batch), lambda i: (0, i)),   # lane-dense output
        compiler_params=pltpu.CompilerParams(
            dimension_semantics=("parallel",),                        # v7x: 2 TCs shard this
            vmem_limit_bytes=48 * 1024 * 1024),                       # explicit VMEM budget
        cost_estimate=pl.CostEstimate(
            flops=flops, transcendentals=0, bytes_accessed=bytes_accessed),
    )(*operands)

    return out[:, :n].T                                               # back to (N, 1)


# ------------------------- reference (pure JAX) ----------------------------- #

def reference_forward(x, params, layers):
    hp = jax.lax.Precision.HIGHEST
    h1 = jax.nn.relu(jnp.dot(x, params["W1"].T, precision=hp) + params["b1"])
    if layers == 1:
        cat = jnp.concatenate([x, h1], axis=1)
        return jnp.dot(cat, params["Wo"].T, precision=hp) + params["bo"]
    h2 = jax.nn.relu(
        jnp.dot(jnp.concatenate([x, h1], axis=1), params["W2"].T, precision=hp)
        + params["b2"])
    cat = jnp.concatenate([x, h1, h2], axis=1)
    return jnp.dot(cat, params["Wo"].T, precision=hp) + params["bo"]


# -------------------------- deterministic init ------------------------------ #

def init_params(key, hidden, layers):
    """Deterministic synthetic init mimicking nn.Linear's uniform(-1/sqrt(fan_in), ...)."""
    def linear(key, fan_in, fan_out):
        kw, kb = jax.random.split(key)
        bound = 1.0 / jnp.sqrt(float(fan_in))
        w = jax.random.uniform(kw, (fan_out, fan_in), jnp.float32, -bound, bound)
        b = jax.random.uniform(kb, (fan_out,), jnp.float32, -bound, bound)
        return w, b

    keys = jax.random.split(key, 3)
    params = {}
    params["W1"], params["b1"] = linear(keys[0], 2, hidden)
    if layers == 1:
        params["Wo"], params["bo"] = linear(keys[2], hidden + 2, 1)
    else:
        params["W2"], params["b2"] = linear(keys[1], hidden + 2, hidden)
        params["Wo"], params["bo"] = linear(keys[2], 2 * hidden + 2, 1)
    return params


# --------------------------------- main ------------------------------------- #

if __name__ == "__main__":
    key = jax.random.PRNGKey(0)
    kx1, kx2, kx3, kp1, kp2 = jax.random.split(key, 5)

    hidden = 32
    ok = True

    # Single-tile paths (300 pads to a 1024-wide tile) and a multi-tile path
    # (40000 -> two 20480-wide tiles, even grid for v7x's two TensorCores).
    x_small = jax.random.normal(kx1, (300, 2), jnp.float32)
    x_mid = jax.random.normal(kx2, (1000, 2), jnp.float32)
    x_multi = jax.random.normal(kx3, (40000, 2), jnp.float32)

    for layers, kp in ((1, kp1), (2, kp2)):
        params = init_params(kp, hidden, layers)
        for x in (x_small, x_mid, x_multi):
            out = jax.block_until_ready(
                cascade_net_forward(x, params, layers=layers))
            ref = reference_forward(x, params, layers)
            if out.shape != (x.shape[0], 1):
                ok = False
            if not jnp.allclose(out, ref, atol=1e-5, rtol=1e-5):
                ok = False

    # bf16 streaming path: x and the MXU LHS are bf16, everything else f32;
    # compare against the f32 reference with a bf16-level tolerance.
    params2 = init_params(kp2, hidden, 2)
    out_bf16 = jax.block_until_ready(
        cascade_net_forward(x_multi, params2, layers=2, compute_dtype=jnp.bfloat16))
    ref_f32 = reference_forward(x_multi, params2, 2)
    if out_bf16.shape != (x_multi.shape[0], 1):
        ok = False
    if not jnp.allclose(out_bf16, ref_f32, atol=5e-2, rtol=5e-2):
        ok = False

    print("KERNEL_OK" if ok else "KERNEL_MISMATCH")
</pallas_src>

<mosaic_0001>
module attributes {stable_mosaic.version = 11 : i64} {
  func.func @_cascade1_kernel(%arg0: i32, %arg1: memref<2x1024xf32, #tpu.memory_space<vmem>>, %arg2: memref<32x4xf32, #tpu.memory_space<vmem>>, %arg3: memref<3xf32, #tpu.memory_space<smem>>, %arg4: memref<1x1024xf32, #tpu.memory_space<vmem>>) attributes {dimension_semantics = [#tpu.dimension_semantics<parallel>], iteration_bounds = array<i64: 1>, scalar_prefetch = 0 : i64, scratch_operands = 0 : i64, tpu.core_type = #tpu.core_type<tc>, window_params = [{transform_indices = @transform_0, window_bounds = array<i64: 2, 1024>}, {pipeline_mode = #tpu.pipeline_mode<synchronous>, transform_indices = @transform_1, window_bounds = array<i64: 32, 4>}, {transform_indices = @transform_2, window_bounds = array<i64: 3>}, {transform_indices = @transform_3, window_bounds = array<i64: 1, 1024>}]} {
    %c0 = arith.constant 0 : index
    %c0_0 = arith.constant 0 : index
    %0 = vector.load %arg1[%c0, %c0_0] : memref<2x1024xf32, #tpu.memory_space<vmem>>, vector<2x1024xf32>
    %1 = vector.extract_strided_slice %0 {offsets = [0, 0], sizes = [1, 1024], strides = [1, 1]} : vector<2x1024xf32> to vector<1x1024xf32>
    %2 = vector.extract_strided_slice %0 {offsets = [1, 0], sizes = [1, 1024], strides = [1, 1]} : vector<2x1024xf32> to vector<1x1024xf32>
    %c0_1 = arith.constant 0 : index
    %c0_2 = arith.constant 0 : index
    %3 = vector.load %arg2[%c0_1, %c0_2] : memref<32x4xf32, #tpu.memory_space<vmem>>, vector<32x4xf32>
    %4 = vector.extract_strided_slice %3 {offsets = [0, 0], sizes = [32, 1], strides = [1, 1]} : vector<32x4xf32> to vector<32x1xf32>
    %5 = vector.extract_strided_slice %3 {offsets = [0, 1], sizes = [32, 1], strides = [1, 1]} : vector<32x4xf32> to vector<32x1xf32>
    %6 = vector.extract_strided_slice %3 {offsets = [0, 2], sizes = [32, 2], strides = [1, 1]} : vector<32x4xf32> to vector<32x2xf32>
    %c0_3 = arith.constant 0 : index
    %7 = memref.load %arg3[%c0_3] : memref<3xf32, #tpu.memory_space<smem>>
    %c1 = arith.constant 1 : index
    %8 = memref.load %arg3[%c1] : memref<3xf32, #tpu.memory_space<smem>>
    %c2 = arith.constant 2 : index
    %9 = memref.load %arg3[%c2] : memref<3xf32, #tpu.memory_space<smem>>
    %10 = vector.extract_strided_slice %6 {offsets = [0, 0], sizes = [32, 1], strides = [1, 1]} : vector<32x2xf32> to vector<32x1xf32>
    %11 = vector.broadcast %10 : vector<32x1xf32> to vector<32x1024xf32>
    %12 = vector.broadcast %1 : vector<1x1024xf32> to vector<32x1024xf32>
    %13 = arith.mulf %11, %12 : vector<32x1024xf32>
    %14 = vector.extract_strided_slice %6 {offsets = [0, 1], sizes = [32, 1], strides = [1, 1]} : vector<32x2xf32> to vector<32x1xf32>
    %15 = vector.broadcast %14 : vector<32x1xf32> to vector<32x1024xf32>
    %16 = vector.broadcast %2 : vector<1x1024xf32> to vector<32x1024xf32>
    %17 = arith.mulf %15, %16 : vector<32x1024xf32>
    %18 = arith.addf %13, %17 : vector<32x1024xf32>
    %19 = vector.broadcast %4 : vector<32x1xf32> to vector<32x1024xf32>
    %20 = arith.addf %18, %19 : vector<32x1024xf32>
    %cst = arith.constant 0.000000e+00 : f32
    %21 = vector.broadcast %cst : f32 to vector<32x1024xf32>
    %22 = arith.maximumf %20, %21 : vector<32x1024xf32>
    %23 = vector.broadcast %7 : f32 to vector<1x1024xf32>
    %24 = arith.mulf %23, %1 : vector<1x1024xf32>
    %25 = vector.broadcast %8 : f32 to vector<1x1024xf32>
    %26 = arith.mulf %25, %2 : vector<1x1024xf32>
    %27 = arith.addf %24, %26 : vector<1x1024xf32>
    %28 = vector.broadcast %5 : vector<32x1xf32> to vector<32x1024xf32>
    %29 = arith.mulf %28, %22 : vector<32x1024xf32>
    %cst_4 = arith.constant dense<0.000000e+00> : vector<1024xf32>
    %30 = vector.multi_reduction <add>, %29, %cst_4 [0] : vector<32x1024xf32> to vector<1024xf32>
    %31 = vector.shape_cast %30 : vector<1024xf32> to vector<1x1024xf32>
    %32 = arith.addf %27, %31 : vector<1x1024xf32>
    %33 = vector.broadcast %9 : f32 to vector<1x1024xf32>
    %34 = arith.addf %32, %33 : vector<1x1024xf32>
    %c0_5 = arith.constant 0 : index
    %c0_6 = arith.constant 0 : index
    %35 = vector.load %arg4[%c0_5, %c0_6] : memref<1x1024xf32, #tpu.memory_space<vmem>>, vector<1x1024xf32>
    tpu.vector_store %arg4[%c0_5, %c0_6], %34 {strides = array<i32>} : memref<1x1024xf32, #tpu.memory_space<vmem>>, vector<1x1024xf32>,
    return
  }
  func.func @transform_0(%arg0: i32) -> (i32, i32) {
    %c0_i32 = arith.constant 0 : i32
    %c0_i32_0 = arith.constant 0 : i32
    return %c0_i32, %arg0 : i32, i32
  }
  func.func @transform_1(%arg0: i32) -> (i32, i32) {
    %c0_i32 = arith.constant 0 : i32
    %c0_i32_0 = arith.constant 0 : i32
    %c0_i32_1 = arith.constant 0 : i32
    return %c0_i32, %c0_i32_0 : i32, i32
  }
  func.func @transform_2(%arg0: i32) -> i32 {
    %c0_i32 = arith.constant 0 : i32
    %c0_i32_0 = arith.constant 0 : i32
    return %c0_i32 : i32
  }
  func.func @transform_3(%arg0: i32) -> (i32, i32) {
    %c0_i32 = arith.constant 0 : i32
    %c0_i32_0 = arith.constant 0 : i32
    return %c0_i32, %arg0 : i32, i32
  }
}

</mosaic_0001>

<bundles_post_ra>
// kernel: cascade_net_forward.1
= control target key start
LH: loop header
LB: loop body
LE: loop exit
PB: predicated region body
PF: predicated region fallthrough
CT: control target
= control target key end

     0   :  { %8 = vsyncpa [#allocation3], 0  ;;  %s524_s15 = smov [#allocation2]   ;;  %s894_s0 = inlined_call_operand.vmem [shape: f32[2,1024], index: 0, kind: input, shape index: {}]   ;;  %s895_s1 = inlined_call_operand.vmem [shape: f32[32,4], index: 1, kind: input, shape index: {}]   ;;  %s896_s2 = inlined_call_operand.vmem [shape: f32[3], index: 2, kind: input, shape index: {}]   ;;  %s897_s3 = inlined_call_operand.vmem [shape: f32[1,1024], index: 3, kind: output, shape index: {}]  }
   0x1   :  { %s18_s14 = sshll.u32 %s896_s2, 4  ;;  %s19_s14 = int_to_ptr.vmem [resolvable:$true] %s18_s14 }
   0x2   :  { %21 = dma.vmem_to_smem %s19_s14, 16, %s524_s15, [#allocation3]  }
   0x3   :  { %522 = dma.done.wait [#allocation3], 16  }
   0x4   :  { %523 = vsyncadd [#allocation3], 4294967280 }
   0x5   :  { %26 = sfence }
   0x6   :  { %v31_v0 = vld [vmem:[%s895_s1 + $0x10] sm:$0xff]  ;;  %v29_v1 = vld [vmem:[%s895_s1] sm:$0xff]  ;;  %v525_v2 = vmov 2   ;;  %v30_v3 = vld [vmem:[%s895_s1 + $0x8] sm:$0xff]  ;;  %v526_v4 = vmov 3   ;;  %v527_v6 = vmov 0  }
   0x7   :  { %501 = vset.pattern.permute.xlu1 %v525_v2  ;;  %500 = vset.pattern.permute.xlu0 %v525_v2  ;;  %v32_v5 = vld [vmem:[%s895_s1 + $0x18] sm:$0xff]  ;;  %v528_v7 = vmov 1   ;;  %v567_v9 = vld [vmem:[%s894_s0] sm:$0xff]  ;;  %v572_v10 = vld [vmem:[%s894_s0 + $0x8] sm:$0xff]  ;;  %s647_s0 = sld [smem:[#allocation2]]  ;;  %vm448_vm0 = vcmask 1041408  }
   0x8   :  { %48 = vperm.xlu1 %501, %v31_v0   ;;  %38 = vperm.xlu0 %500, %v29_v1   ;;  %902 = vst [vmem:[#allocation5_spill] sm:$0xff] %v567_v9  ;;  %v130_v11 = vperm.slane %v567_v9, 1  ;;  %v131_v12 = vperm.slane %v567_v9, 3  ;;  %v132_v13 = vperm.slane %v567_v9, 5  ;;  %v133_v14 = vperm.slane %v567_v9, 7  ;;  %s653_s26 = sld [smem:[#allocation2 + $0x1]] }
   0x9   :  { %503 = vset.pattern.permute.xlu2 %v526_v4  ;;  %903 = vst [vmem:[#allocation6_spill] sm:$0xff] %v572_v10  ;;  %v134_v15 = vperm.slane %v572_v10, 1  ;;  %v135_v16 = vperm.slane %v572_v10, 3  ;;  %v136_v17 = vperm.slane %v572_v10, 5  ;;  %v137_v18 = vperm.slane %v572_v10, 7  ;;  %s874_s27 = sld [smem:[#allocation2 + $0x2]] }
   0xa   :  { %119 = vperm.xlu2 %503, %v30_v3   ;;  %v58_v19 = vperm.slane %v567_v9, 0  ;;  %v59_v20 = vperm.slane %v567_v9, 2  ;;  %v60_v21 = vperm.slane %v567_v9, 4  ;;  %v61_v22 = vperm.slane %v567_v9, 6 }
   0xb   :  { %v62_v23 = vperm.slane %v572_v10, 0  ;;  %v587_v24 = vperm.slane %v130_v11, 1  ;;  %v63_v25 = vperm.slane %v572_v10, 2  ;;  %v64_v26 = vperm.slane %v572_v10, 4 }
   0xc   :  { %v65_v27 = vperm.slane %v572_v10, 6  ;;  %v592_v28 = vperm.slane %v131_v12, 1  ;;  %v594_v29 = vperm.slane %v132_v13, 1  ;;  %v596_v30 = vperm.slane %v133_v14, 1 }
   0xd   :  { %v598_v31 = vperm.slane %v134_v15, 1  ;;  %v600_v32 = vperm.slane %v135_v16, 1  ;;  %v602_v33 = vperm.slane %v136_v17, 1  ;;  %v604_v34 = vperm.slane %v137_v18, 1 }
   0xe   :  { %v606_v35 = vperm.slane %v58_v19, 0  ;;  %v608_v36 = vperm.slane %v59_v20, 0  ;;  %v610_v37 = vperm.slane %v60_v21, 0  ;;  %v612_v38 = vperm.slane %v61_v22, 0 }
   0xf   :  { %v614_v39 = vperm.slane %v62_v23, 0  ;;  %v619_v42 = vperm.slane %v63_v25, 0  ;;  %v621_v43 = vperm.slane %v64_v26, 0  ;;  %v623_v44 = vperm.slane %v65_v27, 0 }
  0x10   :  { %502 = vset.pattern.permute.xlu1 %v526_v4  ;;  %43 = vperm.xlu0 %500, %v30_v3   ;;  %vm450_vm1 = vcmask 1045508   ;;  %vm452_vm2 = vcmask 1043456   ;;  %vm473_vm3 = vcmask 1040384   ;;  %vm475_vm4 = vcmask 1042434  }
  0x11   :  { %115 = vperm.xlu1 %502, %v29_v1   ;;  %vm478_vm5 = vcmask 1044484   ;;  %vm480_vm6 = vcmask 1046534  }
  0x12   :  { %123 = vperm.xlu2 %503, %v31_v0  }
  0x18   :  { %53 = vperm.xlu0 %500, %v32_v5  }
  0x19   :  { %127 = vperm.xlu1 %502, %v32_v5  }
  0x1a   :  { %504 = vset.pattern.permute.xlu2 %v527_v6 }
  0x1b   :  { %219 = vperm.xlu2 %504, %v29_v1  }
  0x20   :  { %505 = vset.pattern.permute.xlu0 %v527_v6 }
  0x21   :  { %506 = vset.pattern.permute.xlu1 %v527_v6  ;;  %223 = vperm.xlu0 %505, %v30_v3  }
  0x22   :  { %227 = vperm.xlu1 %506, %v31_v0  }
  0x23   :  { %231 = vperm.xlu2 %504, %v32_v5  }
  0x29   :  { %509 = vset.pattern.permute.xlu0 %v528_v7 }
  0x2a   :  { %507 = vset.pattern.permute.xlu1 %v528_v7  ;;  %323 = vperm.xlu0 %509, %v31_v0  }
  0x2b   :  { %315 = vperm.xlu1 %507, %v29_v1   ;;  %508 = vset.pattern.permute.xlu2 %v528_v7 }
  0x2c   :  { %319 = vperm.xlu2 %508, %v30_v3  }
  0x33   :  { %327 = vperm.xlu1 %507, %v32_v5  }
  0x64   :  { %v120_v8 = vpop.permute.xlu2 %119 }
  0x65   :  { %v617_v41 = vmul.f32 %v587_v24, %v120_v8  ;;  %v626_v45 = vmul.f32 %v592_v28, %v120_v8  ;;  %v629_v46 = vmul.f32 %v594_v29, %v120_v8  ;;  %v632_v47 = vmul.f32 %v596_v30, %v120_v8 }
  0x66   :  { %v635_v48 = vmul.f32 %v598_v31, %v120_v8  ;;  %v638_v51 = vmul.f32 %v600_v32, %v120_v8  ;;  %v641_v52 = vmul.f32 %v602_v33, %v120_v8  ;;  %v644_v53 = vmul.f32 %v604_v34, %v120_v8 }
  0x6c   :  { %v124_v40 = vpop.permute.xlu2 %123 }
  0x6d   :  { %v170_v54 = vmul.f32 %v587_v24, %v124_v40  ;;  %v171_v55 = vmul.f32 %v592_v28, %v124_v40  ;;  %v172_v56 = vmul.f32 %v594_v29, %v124_v40  ;;  %v173_v57 = vmul.f32 %v596_v30, %v124_v40 }
  0x6e   :  { %v174_v58 = vmul.f32 %v598_v31, %v124_v40  ;;  %v175_v60 = vmul.f32 %v600_v32, %v124_v40  ;;  %v176_v61 = vmul.f32 %v602_v33, %v124_v40  ;;  %v177_v62 = vmul.f32 %v604_v34, %v124_v40 }
  0x75   :  { %v220_v16 = vpop.permute.xlu2 %219 }
  0x7a   :  { %v49_v49 = vpop.permute.xlu1 %48  ;;  %v39_v50 = vpop.permute.xlu0 %38 }
  0x7b   :  { %v98_v59 = vmul.f32 %v606_v35, %v49_v49  ;;  %v99_v63 = vmul.f32 %v608_v36, %v49_v49  ;;  %v100_v0 = vmul.f32 %v610_v37, %v49_v49  ;;  %v101_v1 = vmul.f32 %v612_v38, %v49_v49 }
  0x7c   :  { %v102_v2 = vmul.f32 %v614_v39, %v49_v49  ;;  %v103_v3 = vmul.f32 %v619_v42, %v49_v49  ;;  %v104_v4 = vmul.f32 %v621_v43, %v49_v49  ;;  %v105_v5 = vmul.f32 %v623_v44, %v49_v49 }
  0x7d   :  { %v82_v6 = vmul.f32 %v606_v35, %v39_v50  ;;  %v83_v7 = vmul.f32 %v608_v36, %v39_v50  ;;  %v84_v8 = vmul.f32 %v610_v37, %v39_v50  ;;  %v85_v11 = vmul.f32 %v612_v38, %v39_v50 }
  0x7e   :  { %v86_v12 = vmul.f32 %v614_v39, %v39_v50  ;;  %v87_v13 = vmul.f32 %v619_v42, %v39_v50  ;;  %v88_v14 = vmul.f32 %v621_v43, %v39_v50  ;;  %v89_v15 = vmul.f32 %v623_v44, %v39_v50 }
  0x7f   :  { %v674_v17 = vadd.f32 %v170_v54, %v98_v59  ;;  %v676_v19 = vadd.f32 %v171_v55, %v99_v63  ;;  %v678_v20 = vadd.f32 %v172_v56, %v100_v0  ;;  %v680_v21 = vadd.f32 %v173_v57, %v101_v1 }
  0x80   :  { %v682_v22 = vadd.f32 %v174_v58, %v102_v2  ;;  %v684_v25 = vadd.f32 %v175_v60, %v103_v3  ;;  %v686_v26 = vadd.f32 %v176_v61, %v104_v4  ;;  %v688_v27 = vadd.f32 %v177_v62, %v105_v5 }
  0x82   :  { %v44_v18 = vpop.permute.xlu0 %43  ;;  %904 = vst [vmem:[#allocation7_spill] sm:$0xff] %v682_v22 }
  0x83   :  { %v116_v23 = vpop.permute.xlu1 %115  ;;  %905 = vst [vmem:[#allocation8_spill] sm:$0xff] %v684_v25  ;;  %v90_v49 = vmul.f32 %v606_v35, %v44_v18  ;;  %v91_v50 = vmul.f32 %v608_v36, %v44_v18  ;;  %v92_v54 = vmul.f32 %v610_v37, %v44_v18 }
  0x84   :  { %906 = vst [vmem:[#allocation9_spill] sm:$0xff] %v686_v26  ;;  %v154_v56 = vmul.f32 %v587_v24, %v116_v23  ;;  %v155_v57 = vmul.f32 %v592_v28, %v116_v23  ;;  %v156_v58 = vmul.f32 %v594_v29, %v116_v23  ;;  %v157_v59 = vmul.f32 %v596_v30, %v116_v23 }
  0x85   :  { %907 = vst [vmem:[#allocation10_spill] sm:$0xff] %v688_v27  ;;  %v158_v60 = vmul.f32 %v598_v31, %v116_v23  ;;  %v159_v61 = vmul.f32 %v600_v32, %v116_v23  ;;  %v160_v62 = vmul.f32 %v602_v33, %v116_v23  ;;  %v161_v63 = vmul.f32 %v604_v34, %v116_v23  ;;  %v723_v23 = vpop.permute.xlu2 %231 }
  0x86   :  { %v186_v0 = vadd.f32 %v154_v56, %v82_v6  ;;  %v187_v1 = vadd.f32 %v155_v57, %v83_v7  ;;  %v188_v2 = vadd.f32 %v156_v58, %v84_v8  ;;  %v189_v3 = vadd.f32 %v157_v59, %v85_v11 }
  0x87   :  { %v190_v4 = vadd.f32 %v158_v60, %v86_v12  ;;  %v191_v5 = vadd.f32 %v159_v61, %v87_v13  ;;  %v192_v55 = vadd.f32 %v160_v62, %v88_v14  ;;  %v193_v40 = vadd.f32 %v161_v63, %v89_v15 }
  0x88   :  { %v703_v10 = vadd.f32 %v220_v16, %v186_v0  ;;  %v705_v9 = vadd.f32 %v220_v16, %v187_v1  ;;  %v707_v27 = vadd.f32 %v220_v16, %v188_v2  ;;  %v709_v26 = vadd.f32 %v220_v16, %v189_v3 }
  0x89   :  { %v711_v25 = vadd.f32 %v220_v16, %v190_v4  ;;  %v713_v22 = vadd.f32 %v220_v16, %v191_v5  ;;  %v715_v6 = vadd.f32 %v220_v16, %v192_v55  ;;  %v717_v7 = vadd.f32 %v220_v16, %v193_v40 }
  0x8a   :  { %v54_v8 = vpop.permute.xlu0 %53  ;;  %v93_v11 = vmul.f32 %v612_v38, %v44_v18  ;;  %v94_v12 = vmul.f32 %v614_v39, %v44_v18  ;;  %v95_v13 = vmul.f32 %v619_v42, %v44_v18  ;;  %v96_v14 = vmul.f32 %v621_v43, %v44_v18 }
  0x8b   :  { %v128_v15 = vpop.permute.xlu1 %127  ;;  %v97_v56 = vmul.f32 %v623_v44, %v44_v18  ;;  %v266_v57 = vmax.f32 %v703_v10, 0.0  ;;  %v267_v55 = vmax.f32 %v705_v9, 0.0  ;;  %v268_v16 = vmax.f32 %v707_v27, 0.0 }
  0x8c   :  { %v269_v40 = vmax.f32 %v709_v26, 0.0  ;;  %v106_v62 = vmul.f32 %v606_v35, %v54_v8  ;;  %v107_v18 = vmul.f32 %v608_v36, %v54_v8  ;;  %v737_v63 = vmul.f32 %v610_v37, %v54_v8 }
  0x8d   :  { %v740_v0 = vmul.f32 %v612_v38, %v54_v8  ;;  %v743_v1 = vmul.f32 %v614_v39, %v54_v8  ;;  %v746_v2 = vmul.f32 %v619_v42, %v54_v8  ;;  %v749_v3 = vmul.f32 %v621_v43, %v54_v8 }
  0x8e   :  { %v752_v4 = vmul.f32 %v623_v44, %v54_v8  ;;  %v178_v35 = vmul.f32 %v587_v24, %v128_v15  ;;  %v179_v36 = vmul.f32 %v592_v28, %v128_v15  ;;  %v757_v37 = vmul.f32 %v594_v29, %v128_v15 }
  0x8f   :  { %v760_v38 = vmul.f32 %v596_v30, %v128_v15  ;;  %v763_v39 = vmul.f32 %v598_v31, %v128_v15  ;;  %v766_v42 = vmul.f32 %v600_v32, %v128_v15  ;;  %v769_v43 = vmul.f32 %v602_v33, %v128_v15 }
  0x90   :  { %v194_v44 = vadd.f32 %v617_v41, %v90_v49  ;;  %v195_v24 = vadd.f32 %v626_v45, %v91_v50  ;;  %v196_v28 = vadd.f32 %v629_v46, %v92_v54  ;;  %v197_v29 = vadd.f32 %v632_v47, %v93_v11  ;;  %v320_v49 = vpop.permute.xlu2 %319 }
  0x91   :  { %v198_v30 = vadd.f32 %v635_v48, %v94_v12  ;;  %v199_v31 = vadd.f32 %v638_v51, %v95_v13  ;;  %v200_v8 = vadd.f32 %v641_v52, %v96_v14  ;;  %v201_v32 = vadd.f32 %v644_v53, %v97_v56 }
  0x92   :  { %v185_v51 = vmul.f32 %v604_v34, %v128_v15  ;;  %v210_v52 = vadd.f32 %v178_v35, %v106_v62  ;;  %v211_v13 = vadd.f32 %v179_v36, %v107_v18  ;;  %v908_v62 = vld [vmem:[#allocation7_spill] sm:$0xff]  ;;  %v909_v35 = vld [vmem:[#allocation8_spill] sm:$0xff]  ;;  %v214_v10 = vadd.f32 %v763_v39, %v743_v1 }
  0x93   :  { %v224_v5 = vpop.permute.xlu0 %223  ;;  %v215_v9 = vadd.f32 %v766_v42, %v746_v2  ;;  %v216_v27 = vadd.f32 %v769_v43, %v749_v3  ;;  %v914_v2 = vmax.f32 %v715_v6, 0.0  ;;  %v916_v6 = vld [vmem:[#allocation5_spill] sm:$0xff] }
  0x94   :  { %v228_v61 = vpop.permute.xlu1 %227  ;;  %v242_v33 = vadd.f32 %v224_v5, %v194_v44  ;;  %v243_v60 = vadd.f32 %v224_v5, %v195_v24  ;;  %v244_v59 = vadd.f32 %v224_v5, %v196_v28  ;;  %v245_v41 = vadd.f32 %v224_v5, %v197_v29 }
  0x95   :  { %v246_v45 = vadd.f32 %v224_v5, %v198_v30  ;;  %v247_v50 = vadd.f32 %v224_v5, %v199_v31  ;;  %v248_v46 = vadd.f32 %v224_v5, %v200_v8  ;;  %v249_v54 = vadd.f32 %v224_v5, %v201_v32  ;;  %v910_v30 = vld [vmem:[#allocation9_spill] sm:$0xff] }
  0x96   :  { %v274_v47 = vmax.f32 %v242_v33, 0.0  ;;  %v275_v11 = vmax.f32 %v243_v60, 0.0  ;;  %v276_v58 = vmax.f32 %v244_v59, 0.0  ;;  %v277_v48 = vmax.f32 %v245_v41, 0.0 }
  0x97   :  { %v278_v12 = vmax.f32 %v246_v45, 0.0  ;;  %v279_v53 = vmax.f32 %v247_v50, 0.0  ;;  %v280_v14 = vmax.f32 %v248_v46, 0.0  ;;  %v281_v56 = vmax.f32 %v249_v54, 0.0 }
  0x98   :  { %v780_v44 = vmul.f32 %v320_v49, %v274_v47  ;;  %v782_v24 = vmul.f32 %v320_v49, %v275_v11  ;;  %v784_v28 = vmul.f32 %v320_v49, %v276_v58  ;;  %v786_v29 = vmul.f32 %v320_v49, %v277_v48  ;;  %v911_v58 = vld [vmem:[#allocation10_spill] sm:$0xff] }
  0x99   :  { %v788_v5 = vmul.f32 %v320_v49, %v278_v12  ;;  %v250_v59 = vadd.f32 %v228_v61, %v674_v17  ;;  %v251_v34 = vadd.f32 %v228_v61, %v676_v19  ;;  %v252_v15 = vadd.f32 %v228_v61, %v678_v20 }
  0x9a   :  { %v253_v60 = vadd.f32 %v228_v61, %v680_v21  ;;  %v254_v18 = vadd.f32 %v228_v61, %v908_v62  ;;  %v255_v36 = vadd.f32 %v228_v61, %v909_v35  ;;  %v256_v31 = vadd.f32 %v228_v61, %v910_v30 }
  0x9b   :  { %v257_v8 = vadd.f32 %v228_v61, %v911_v58  ;;  %v798_v32 = vmul.f32 %v320_v49, %v279_v53  ;;  %v800_v33 = vmul.f32 %v320_v49, %v280_v14  ;;  %v802_v41 = vmul.f32 %v320_v49, %v281_v56 }
  0x9c   :  { %v324_v17 = vpop.permute.xlu0 %323  ;;  %v282_v19 = vmax.f32 %v250_v59, 0.0  ;;  %v283_v45 = vmax.f32 %v251_v34, 0.0  ;;  %v284_v20 = vmax.f32 %v252_v15, 0.0  ;;  %v285_v50 = vmax.f32 %v253_v60, 0.0 }
  0x9d   :  { %v286_v21 = vmax.f32 %v254_v18, 0.0  ;;  %v316_v46 = vpop.permute.xlu1 %315  ;;  %v287_v54 = vmax.f32 %v255_v36, 0.0  ;;  %v288_v47 = vmax.f32 %v256_v31, 0.0  ;;  %v289_v11 = vmax.f32 %v257_v8, 0.0 }
  0x9e   :  { %v346_v48 = vmul.f32 %v324_v17, %v282_v19  ;;  %v347_v12 = vmul.f32 %v324_v17, %v283_v45  ;;  %v348_v62 = vmul.f32 %v324_v17, %v284_v20  ;;  %v349_v61 = vmul.f32 %v324_v17, %v285_v50  ;;  %v918_v45 = vld [vmem:[#allocation6_spill] sm:$0xff] }
  0x9f   :  { %v350_v53 = vmul.f32 %v324_v17, %v286_v21  ;;  %v351_v35 = vmul.f32 %v324_v17, %v287_v54  ;;  %v804_v14 = vmul.f32 %v324_v17, %v288_v47  ;;  %v806_v49 = vmul.f32 %v324_v17, %v289_v11 }
  0xa0   :  { %v330_v56 = vmul.f32 %v316_v46, %v266_v57  ;;  %v331_v59 = vmul.f32 %v316_v46, %v267_v55  ;;  %v332_v34 = vmul.f32 %v316_v46, %v268_v16  ;;  %v333_v15 = vmul.f32 %v316_v46, %v269_v40 }
  0xa1   :  { %v912_v60 = vmax.f32 %v711_v25, 0.0  ;;  %v212_v36 = vadd.f32 %v757_v37, %v737_v63  ;;  %v213_v30 = vadd.f32 %v760_v38, %v740_v0  ;;  %v217_v26 = vadd.f32 %v185_v51, %v752_v4 }
  0xa2   :  { %v258_v25 = vadd.f32 %v723_v23, %v210_v52  ;;  %v259_v57 = vadd.f32 %v723_v23, %v211_v13  ;;  %v262_v40 = vadd.f32 %v723_v23, %v214_v10  ;;  %v263_v63 = vadd.f32 %v723_v23, %v215_v9 }
  0xa3   :  { %v334_v18 = vmul.f32 %v316_v46, %v912_v60  ;;  %v260_v55 = vadd.f32 %v723_v23, %v212_v36  ;;  %v261_v16 = vadd.f32 %v723_v23, %v213_v30  ;;  %v913_v0 = vmax.f32 %v713_v22, 0.0 }
  0xa4   :  { %v336_v3 = vmul.f32 %v316_v46, %v914_v2  ;;  %v264_v4 = vadd.f32 %v723_v23, %v216_v27  ;;  %v265_v37 = vadd.f32 %v723_v23, %v217_v26  ;;  %v915_v38 = vmax.f32 %v717_v7, 0.0 }
  0xa5   :  { %v335_v1 = vmul.f32 %v316_v46, %v913_v0  ;;  %v328_v42 = vpop.permute.xlu1 %327  ;;  %v290_v43 = vmax.f32 %v258_v25, 0.0  ;;  %v291_v51 = vmax.f32 %v259_v57, 0.0  ;;  %v292_v52 = vmax.f32 %v260_v55, 0.0 }
  0xa6   :  { %v337_v39 = vmul.f32 %v316_v46, %v915_v38  ;;  %v293_v13 = vmax.f32 %v261_v16, 0.0  ;;  %v294_v22 = vmax.f32 %v262_v40, 0.0  ;;  %v295_v31 = vmax.f32 %v263_v63, 0.0 }
  0xa7   :  { %v296_v58 = vmax.f32 %v264_v4, 0.0  ;;  %v297_v8 = vmax.f32 %v265_v37, 0.0  ;;  %v917_v17 = vstv %s647_s0  ;;  %v920_v7 = vstv %s653_s26 }
  0xa8   :  { %v846_v19 = vmul.f32 %v917_v17, %v916_v6  ;;  %v919_v20 = vmov %v917_v17  ;;  %v856_v23 = vmul.f32 %v920_v7, %v916_v6  ;;  %v921_v21 = vmov %v920_v7 }
  0xa9   :  { %v851_v50 = vmul.f32 %v919_v20, %v918_v45  ;;  %v861_v46 = vmul.f32 %v921_v21, %v918_v45  ;;  %v354_v54 = vmul.f32 %v328_v42, %v290_v43  ;;  %v355_v47 = vmul.f32 %v328_v42, %v291_v51 }
  0xaa   :  { %v356_v11 = vmul.f32 %v328_v42, %v292_v52  ;;  %v493_v60 = vrot.slane %v856_v23, 9  ;;  %v357_v36 = vmul.f32 %v328_v42, %v293_v13  ;;  %v358_v30 = vmul.f32 %v328_v42, %v294_v22 }
  0xab   :  { %v359_v10 = vmul.f32 %v328_v42, %v295_v31  ;;  %v362_v9 = vadd.f32 %v780_v44, %v330_v56  ;;  %v371_v27 = vadd.f32 %v782_v24, %v331_v59  ;;  %v380_v26 = vadd.f32 %v784_v28, %v332_v34 }
  0xac   :  { %v389_v25 = vadd.f32 %v786_v29, %v333_v15  ;;  %v360_v57 = vmul.f32 %v328_v42, %v296_v58  ;;  %v361_v55 = vmul.f32 %v328_v42, %v297_v8  ;;  %v398_v16 = vadd.f32 %v788_v5, %v334_v18 }
  0xad   :  { %v407_v40 = vadd.f32 %v798_v32, %v335_v1  ;;  %v363_v63 = vadd.f32 %v362_v9, %v346_v48  ;;  %v372_v0 = vadd.f32 %v371_v27, %v347_v12  ;;  %v381_v2 = vadd.f32 %v380_v26, %v348_v62 }
  0xae   :  { %v390_v4 = vadd.f32 %v389_v25, %v349_v61  ;;  %v399_v37 = vadd.f32 %v398_v16, %v350_v53  ;;  %v416_v44 = vadd.f32 %v800_v33, %v336_v3  ;;  %v425_v24 = vadd.f32 %v802_v41, %v337_v39 }
  0xaf   :  { %v408_v38 = vadd.f32 %v407_v40, %v351_v35  ;;  %v364_v56 = vadd.f32 %v363_v63, %v354_v54  ;;  %v373_v28 = vadd.f32 %v372_v0, %v355_v47  ;;  %v382_v59 = vadd.f32 %v381_v2, %v356_v11 }
  0xb0   :  { %v391_v29 = vadd.f32 %v390_v4, %v357_v36  ;;  %v400_v34 = vadd.f32 %v399_v37, %v358_v30  ;;  %v417_v5 = vadd.f32 %v416_v44, %v804_v14  ;;  %v426_v32 = vadd.f32 %v425_v24, %v806_v49 }
  0xb1   :  { %v409_v15 = vadd.f32 %v408_v38, %v359_v10  ;;  %v365_v48 = vrot.slane %v364_v56, 4  ;;  %v374_v12 = vrot.slane %v373_v28, 4  ;;  %v383_v62 = vrot.slane %v382_v59, 4 }
  0xb2   :  { %v392_v61 = vrot.slane %v391_v29, 4  ;;  %v401_v53 = vrot.slane %v400_v34, 4  ;;  %v418_v18 = vadd.f32 %v417_v5, %v360_v57  ;;  %v427_v33 = vadd.f32 %v426_v32, %v361_v55 }
  0xb3   :  { %v410_v35 = vrot.slane %v409_v15, 4  ;;  %v366_v1 = vadd.f32 %v365_v48, %v364_v56  ;;  %v375_v41 = vadd.f32 %v374_v12, %v373_v28  ;;  %v384_v3 = vadd.f32 %v383_v62, %v382_v59 }
  0xb4   :  { %v393_v39 = vadd.f32 %v392_v61, %v391_v29  ;;  %v402_v42 = vadd.f32 %v401_v53, %v400_v34  ;;  %v419_v51 = vrot.slane %v418_v18, 4  ;;  %v428_v14 = vrot.slane %v427_v33, 4 }
  0xb5   :  { %v411_v43 = vadd.f32 %v410_v35, %v409_v15  ;;  %v367_v49 = vrot.slane %v366_v1, 2  ;;  %v376_v52 = vrot.slane %v375_v41, 2  ;;  %v385_v13 = vrot.slane %v384_v3, 2 }
  0xb6   :  { %v394_v22 = vrot.slane %v393_v39, 2  ;;  %v403_v31 = vrot.slane %v402_v42, 2  ;;  %v420_v8 = vadd.f32 %v419_v51, %v418_v18  ;;  %v429_v6 = vadd.f32 %v428_v14, %v427_v33 }
  0xb7   :  { %v412_v58 = vrot.slane %v411_v43, 2  ;;  %v368_v17 = vadd.f32 %v367_v49, %v366_v1  ;;  %v377_v45 = vadd.f32 %v376_v52, %v375_v41  ;;  %v386_v20 = vadd.f32 %v385_v13, %v384_v3 }
  0xb8   :  { %v395_v7 = vadd.f32 %v394_v22, %v393_v39  ;;  %v404_v21 = vadd.f32 %v403_v31, %v402_v42  ;;  %v421_v47 = vrot.slane %v420_v8, 2  ;;  %v430_v11 = vrot.slane %v429_v6, 2 }
  0xb9   :  { %v413_v54 = vadd.f32 %v412_v58, %v411_v43  ;;  %v369_v36 = vrot.slane %v368_v17, 1  ;;  %v378_v30 = vrot.slane %v377_v45, 1  ;;  %v387_v10 = vrot.slane %v386_v20, 1 }
  0xba   :  { %v396_v9 = vrot.slane %v395_v7, 1  ;;  %v405_v27 = vrot.slane %v404_v21, 1  ;;  %v422_v25 = vadd.f32 %v421_v47, %v420_v8  ;;  %v431_v57 = vadd.f32 %v430_v11, %v429_v6 }
  0xbb   :  { %v414_v26 = vrot.slane %v413_v54, 1  ;;  %v494_v55 = vrot.slane %v861_v46, 9  ;;  %v379_v16 = vadd.f32 %v378_v30, %v377_v45  ;;  %v388_v40 = vadd.f32 %v387_v10, %v386_v20 }
  0xbc   :  { %v397_v63 = vadd.f32 %v396_v9, %v395_v7  ;;  %v312_v0 = vadd.f32 %v493_v60, %v846_v19  ;;  %v423_v4 = vrot.slane %v422_v25, 1  ;;  %v432_v37 = vrot.slane %v431_v57, 1 }
  0xbd   :  { %v415_v2 = vadd.f32 %v414_v26, %v413_v54  ;;  %v370_v38 = vadd.f32 %v369_v36, %v368_v17  ;;  %v442_v44 = vrot.slane %v379_v16, 6  ;;  %v443_v24 = vrot.slane %v388_v40, 4 }
  0xbe   :  { %v444_v56 = vrot.slane %v397_v63, 2  ;;  %v406_v28 = vadd.f32 %v405_v27, %v404_v21  ;;  %v424_v59 = vadd.f32 %v423_v4, %v422_v25  ;;  %v433_v29 = vadd.f32 %v432_v37, %v431_v57 }
  0xbf   :  { %v445_v34 = vrot.slane %v415_v2, 6  ;;  %v461_v46 = vstv %s874_s27  ;;  %v313_v15 = vadd.f32 %v494_v55, %v851_v50  ;;  %v449_v5 = vsel %vm448_vm0, %v370_v38, %v442_v44 }
  0xc0   :  { %v451_v32 = vsel %vm450_vm1, %v443_v24, %v444_v56  ;;  %v446_v23 = vrot.slane %v424_v59, 4  ;;  %v447_v19 = vrot.slane %v433_v29, 2 }
  0xc1   :  { %v453_v60 = vsel %vm452_vm2, %v449_v5, %v451_v32  ;;  %v454_v48 = vsel %vm448_vm0, %v406_v28, %v445_v34 }
  0xc2   :  { %v459_v12 = vadd.f32 %v453_v60, %v312_v0  ;;  %v455_v62 = vsel %vm450_vm1, %v446_v23, %v447_v19 }
  0xc3   :  { %v456_v61 = vsel %vm452_vm2, %v454_v48, %v455_v62 }
  0xc4   :  { %v462_v53 = vadd.f32 %v461_v46, %v459_v12  ;;  %v460_v35 = vadd.f32 %v456_v61, %v313_v15 }
  0xc6   :  { %v466_v50 = vrot.slane %v462_v53, 1  ;;  %v467_v18 = vrot.slane %v462_v53, 2  ;;  %v468_v33 = vrot.slane %v462_v53, 3  ;;  %v463_v1 = vadd.f32 %v461_v46, %v460_v35 }
  0xc8   :  { %v474_v41 = vsel %vm473_vm3, %v462_v53, %v466_v50  ;;  %v476_v3 = vsel %vm475_vm4, %v467_v18, %v468_v33  ;;  %v469_v39 = vrot.slane %v463_v1, 4  ;;  %v470_v42 = vrot.slane %v463_v1, 5 }
  0xc9   :  { %v471_v43 = vrot.slane %v463_v1, 6  ;;  %v472_v51 = vrot.slane %v463_v1, 7  ;;  %v477_v14 = vsel %vm448_vm0, %v474_v41, %v476_v3 }
  0xca   :  { %v479_v49 = vsel %vm478_vm5, %v469_v39, %v470_v42 }
  0xcb   :  { %v481_v52 = vsel %vm480_vm6, %v471_v43, %v472_v51 }
  0xcc   :  { %v482_v13 = vsel %vm450_vm1, %v479_v49, %v481_v52 }
  0xcd   :  { %v483_v22 = vsel %vm452_vm2, %v477_v14, %v482_v13 }
  0xce   :  { %485 = vst [vmem:[%s897_s3] sm:$0xff] %v483_v22 }
  0xcf   :  { %490 = vsyncpa [#allocation3], 1 }

</bundles_post_ra>
